<compile_context>
chip_gen: v6e
topology: v6e:2x2x1
jax: 0.10.0
libtpu: 0.0.40
codegen_flags: <defaults>
</compile_context>

<pallas_src>
import jax
import jax.numpy as jnp
from jax.experimental import pallas as pl
from jax.experimental.pallas import tpu as pltpu


def _round_up(x: int, m: int) -> int:
    return ((x + m - 1) // m) * m


def _kernel_f32_out(x_ref, w_ref, b_ref, o_ref):
    """f32 output: accumulate directly into the resident output block."""
    k = pl.program_id(2)

    @pl.when(k == 0)
    def _init():
        # Fold the bias into the accumulator init (broadcast over rows).
        o_ref[...] = jnp.broadcast_to(
            b_ref[...].astype(jnp.float32), o_ref.shape
        )

    o_ref[...] += jnp.dot(
        x_ref[...], w_ref[...], preferred_element_type=jnp.float32
    )

    @pl.when(k == pl.num_programs(2) - 1)
    def _finalize():
        o_ref[...] = jnp.maximum(o_ref[...], 0.0)


def _kernel_scratch_acc(x_ref, w_ref, b_ref, o_ref, acc_ref):
    """Non-f32 output: f32 VMEM scratch accumulator, cast at the final store."""
    k = pl.program_id(2)

    @pl.when(k == 0)
    def _init():
        acc_ref[...] = jnp.broadcast_to(
            b_ref[...].astype(jnp.float32), acc_ref.shape
        )

    acc_ref[...] += jnp.dot(
        x_ref[...], w_ref[...], preferred_element_type=jnp.float32
    )

    @pl.when(k == pl.num_programs(2) - 1)
    def _finalize():
        o_ref[...] = jnp.maximum(acc_ref[...], 0.0).astype(o_ref.dtype)


def mylinear(x, weight, bias, *, tm=512, tn=512, tk=512, compute_dtype=None):
    """Pallas equivalent of MyLinear.forward: relu(x @ weight + bias).

    compute_dtype: optional dtype (e.g. jnp.bfloat16) for the matmul inputs
                   (fast MXU path); accumulation, bias add and ReLU stay f32.
    """
    B, K = x.shape
    K2, N = weight.shape
    assert K == K2 and bias.shape == (N,)
    out_dtype = x.dtype

    if compute_dtype is not None:
        x = x.astype(compute_dtype)
        weight = weight.astype(compute_dtype)
    in_itemsize = jnp.dtype(x.dtype).itemsize
    out_itemsize = jnp.dtype(out_dtype).itemsize

    # --- Tile selection -----------------------------------------------------
    # M aligned to 8 rows for 32-bit inputs, 16 for bf16, 32 for 8-bit.
    m_align = max(8, 32 // in_itemsize)
    tm = min(tm, _round_up(B, m_align))
    tn = min(tn, _round_up(N, 128))
    tk = min(tk, _round_up(K, 128))
    # Prefer a tk (multiple of 128) that divides K exactly -> no K padding.
    if K % tk != 0:
        for cand in range(tk, 0, -128):
            if K % cand == 0:
                tk = cand
                break
    # Keep >= 2 parallel N blocks when the M grid collapses to one block so
    # v7x's two TensorCores both get work (no-op on single-TC v5e/v6e).
    if pl.cdiv(B, tm) == 1 and pl.cdiv(N, tn) == 1 and N > 128:
        tn = max(128, _round_up(pl.cdiv(N, 2), 128))

    # --- Zero-pad only the contraction axis (exactness requirement) ---------
    Kp = _round_up(K, tk)
    if Kp != K:
        x = jnp.pad(x, ((0, 0), (0, Kp - K)))
        weight = jnp.pad(weight, ((0, Kp - K), (0, 0)))
    bias2d = bias.reshape(1, N)  # lane-major bias, resident per N tile

    grid = (pl.cdiv(B, tm), pl.cdiv(N, tn), Kp // tk)

    # --- Kernel variant / scratch --------------------------------------------
    if jnp.dtype(out_dtype) == jnp.dtype(jnp.float32):
        kernel = _kernel_f32_out
        scratch_shapes = []
    else:
        kernel = _kernel_scratch_acc
        scratch_shapes = [pltpu.VMEM((tm, tn), jnp.float32)]

    # --- Compiler params (raise scoped VMEM limit only if tiles demand it) ---
    vmem_est = (
        2 * (tm * tk + tk * tn) * in_itemsize   # double-buffered X, W
        + 2 * tm * tn * out_itemsize            # output block
        + 2 * tn * 4                            # bias tile
        + (tm * tn * 4 if scratch_shapes else 0)
    )
    params = dict(dimension_semantics=("parallel", "parallel", "arbitrary"))
    if vmem_est > (14 << 20):
        params["vmem_limit_bytes"] = min(vmem_est + (4 << 20), 128 << 20)

    cost = pl.CostEstimate(
        flops=2 * B * N * Kp,
        transcendentals=0,
        bytes_accessed=(
            B * Kp * in_itemsize * grid[1]      # X re-read per N block
            + Kp * N * in_itemsize * grid[0]    # W re-read per M block
            + N * 4
            + B * N * out_itemsize
        ),
    )

    return pl.pallas_call(
        kernel,
        out_shape=jax.ShapeDtypeStruct((B, N), out_dtype),
        grid=grid,
        in_specs=[
            pl.BlockSpec((tm, tk), lambda i, j, k: (i, k)),  # X tile
            pl.BlockSpec((tk, tn), lambda i, j, k: (k, j)),  # W tile
            pl.BlockSpec((1, tn), lambda i, j, k: (0, j)),   # bias tile (resident over k)
        ],
        out_specs=pl.BlockSpec((tm, tn), lambda i, j, k: (i, j)),
        scratch_shapes=scratch_shapes,
        compiler_params=pltpu.CompilerParams(**params),
        cost_estimate=cost,
    )(x, weight, bias2d)


if __name__ == "__main__":
    key = jax.random.PRNGKey(0)
    kx, kw, kb = jax.random.split(key, 3)

    # --- Module-scale shapes: MyLinear(in_units=32, units=64), batch=2 ------
    B, K, N = 2, 32, 64
    X = jax.random.normal(kx, (B, K), dtype=jnp.float32)
    W = jax.random.normal(kw, (K, N), dtype=jnp.float32)
    b = jax.random.normal(kb, (N,), dtype=jnp.float32)

    out = jax.block_until_ready(mylinear(X, W, b))
    ref = jnp.maximum(X @ W + b, 0.0)
    assert out.shape == (B, N)
    assert out.dtype == X.dtype
    assert jnp.allclose(out, ref, atol=1e-5, rtol=1e-5)

    # --- Larger shapes exercising the (M, N, K) grid + K accumulator --------
    B2, K2d, N2 = 256, 384, 512
    X2 = jax.random.normal(kx, (B2, K2d), dtype=jnp.float32)
    W2 = jax.random.normal(kw, (K2d, N2), dtype=jnp.float32)
    b2 = jax.random.normal(kb, (N2,), dtype=jnp.float32)

    ref2 = jnp.maximum(
        jax.lax.dot(X2, W2, precision=jax.lax.Precision.HIGHEST) + b2, 0.0
    )

    # f32 path; small tiles force a real multi-step (M, N, K) grid.
    out2 = jax.block_until_ready(mylinear(X2, W2, b2, tm=128, tn=256, tk=128))
    assert out2.shape == (B2, N2)
    assert jnp.allclose(out2, ref2, atol=5e-3, rtol=5e-3)

    # Default (large-tile) path; also exercises the 2-parallel-N-block split.
    out2_big = jax.block_until_ready(mylinear(X2, W2, b2))
    assert jnp.allclose(out2_big, ref2, atol=5e-3, rtol=5e-3)

    # bf16-input MXU fast path; accumulate / bias / ReLU stay f32.
    out2_bf16 = jax.block_until_ready(
        mylinear(X2, W2, b2, compute_dtype=jnp.bfloat16)
    )
    assert out2_bf16.dtype == jnp.float32
    assert jnp.allclose(out2_bf16, ref2, atol=0.5, rtol=0.05)

    print("KERNEL_OK")
</pallas_src>

<mosaic_0001>
module attributes {stable_mosaic.version = 11 : i64} {
  func.func @_kernel_f32_out(%arg0: i32, %arg1: i32, %arg2: i32, %arg3: memref<8x128xf32, #tpu.memory_space<vmem>>, %arg4: memref<128x128xf32, #tpu.memory_space<vmem>>, %arg5: memref<1x128xf32, #tpu.memory_space<vmem>>, %arg6: memref<8x128xf32, #tpu.memory_space<vmem>>) attributes {dimension_semantics = [#tpu.dimension_semantics<parallel>, #tpu.dimension_semantics<parallel>, #tpu.dimension_semantics<arbitrary>], iteration_bounds = array<i64: 1, 1, 1>, scalar_prefetch = 0 : i64, scratch_operands = 0 : i64, tpu.core_type = #tpu.core_type<tc>, window_params = [{transform_indices = @transform_0, window_bounds = array<i64: 8, 128>}, {transform_indices = @transform_1, window_bounds = array<i64: 128, 128>}, {transform_indices = @transform_2, window_bounds = array<i64: 1, 128>}, {transform_indices = @transform_3, window_bounds = array<i64: 8, 128>}]} {
    %c0_i32 = arith.constant 0 : i32
    %0 = arith.cmpi eq, %arg2, %c0_i32 : i32
    %1 = arith.extui %0 : i1 to i32
    %c0_i32_0 = arith.constant 0 : i32
    %2 = arith.cmpi ne, %1, %c0_i32_0 : i32
    scf.if %2 {
      %c0_10 = arith.constant 0 : index
      %c0_11 = arith.constant 0 : index
      %12 = vector.load %arg5[%c0_10, %c0_11] : memref<1x128xf32, #tpu.memory_space<vmem>>, vector<1x128xf32>
      %13 = vector.shape_cast %12 : vector<1x128xf32> to vector<1x128xf32>
      %14 = vector.broadcast %13 : vector<1x128xf32> to vector<8x128xf32>
      %c0_12 = arith.constant 0 : index
      %c0_13 = arith.constant 0 : index
      %15 = vector.load %arg6[%c0_12, %c0_13] : memref<8x128xf32, #tpu.memory_space<vmem>>, vector<8x128xf32>
      tpu.vector_store %arg6[%c0_12, %c0_13], %14 {strides = array<i32>} : memref<8x128xf32, #tpu.memory_space<vmem>>, vector<8x128xf32>,
    } else {
    }
    %c0 = arith.constant 0 : index
    %c0_1 = arith.constant 0 : index
    %3 = vector.load %arg6[%c0, %c0_1] : memref<8x128xf32, #tpu.memory_space<vmem>>, vector<8x128xf32>
    %c0_2 = arith.constant 0 : index
    %c0_3 = arith.constant 0 : index
    %4 = vector.load %arg3[%c0_2, %c0_3] : memref<8x128xf32, #tpu.memory_space<vmem>>, vector<8x128xf32>
    %c0_4 = arith.constant 0 : index
    %c0_5 = arith.constant 0 : index
    %5 = vector.load %arg4[%c0_4, %c0_5] : memref<128x128xf32, #tpu.memory_space<vmem>>, vector<128x128xf32>
    %cst = arith.constant dense<0.000000e+00> : vector<8x128xf32>
    %6 = tpu.matmul %4, %5, %cst {dimension_numbers = #tpu.dot_dimension_numbers<[1], [0], [0], [1], [0, 0, 1, 1], [], []>} : vector<8x128xf32>, vector<128x128xf32>, vector<8x128xf32> -> vector<8x128xf32>
    %7 = arith.addf %3, %6 : vector<8x128xf32>
    %c0_6 = arith.constant 0 : index
    %c0_7 = arith.constant 0 : index
    %8 = vector.load %arg6[%c0_6, %c0_7] : memref<8x128xf32, #tpu.memory_space<vmem>>, vector<8x128xf32>
    tpu.vector_store %arg6[%c0_6, %c0_7], %7 {strides = array<i32>} : memref<8x128xf32, #tpu.memory_space<vmem>>, vector<8x128xf32>,
    %c0_i32_8 = arith.constant 0 : i32
    %9 = arith.cmpi eq, %arg2, %c0_i32_8 : i32
    %10 = arith.extui %9 : i1 to i32
    %c0_i32_9 = arith.constant 0 : i32
    %11 = arith.cmpi ne, %10, %c0_i32_9 : i32
    scf.if %11 {
      %c0_10 = arith.constant 0 : index
      %c0_11 = arith.constant 0 : index
      %12 = vector.load %arg6[%c0_10, %c0_11] : memref<8x128xf32, #tpu.memory_space<vmem>>, vector<8x128xf32>
      %cst_12 = arith.constant 0.000000e+00 : f32
      %13 = vector.broadcast %cst_12 : f32 to vector<8x128xf32>
      %14 = arith.maximumf %12, %13 : vector<8x128xf32>
      %c0_13 = arith.constant 0 : index
      %c0_14 = arith.constant 0 : index
      %15 = vector.load %arg6[%c0_13, %c0_14] : memref<8x128xf32, #tpu.memory_space<vmem>>, vector<8x128xf32>
      tpu.vector_store %arg6[%c0_13, %c0_14], %14 {strides = array<i32>} : memref<8x128xf32, #tpu.memory_space<vmem>>, vector<8x128xf32>,
    } else {
    }
    return
  }
  func.func @transform_0(%arg0: i32, %arg1: i32, %arg2: i32) -> (i32, i32) {
    %c0_i32 = arith.constant 0 : i32
    return %arg0, %arg2 : i32, i32
  }
  func.func @transform_1(%arg0: i32, %arg1: i32, %arg2: i32) -> (i32, i32) {
    %c0_i32 = arith.constant 0 : i32
    return %arg2, %arg1 : i32, i32
  }
  func.func @transform_2(%arg0: i32, %arg1: i32, %arg2: i32) -> (i32, i32) {
    %c0_i32 = arith.constant 0 : i32
    %c0_i32_0 = arith.constant 0 : i32
    return %c0_i32, %arg1 : i32, i32
  }
  func.func @transform_3(%arg0: i32, %arg1: i32, %arg2: i32) -> (i32, i32) {
    %c0_i32 = arith.constant 0 : i32
    return %arg0, %arg1 : i32, i32
  }
}

</mosaic_0001>

<bundles_post_ra>
// kernel: tpu_custom_call.1
= control target key start
LH: loop header
LB: loop body
LE: loop exit
PB: predicated region body
PF: predicated region fallthrough
CT: control target
= control target key end

     0   :  { %8 = vsyncpa [#allocation3], 0  ;;  %v219_v1 = vmov 0.0   ;;  %vm220_vm0 = vmmov 0   ;;  %s301_s0 = inlined_call_operand.vmem [shape: f32[2,128], index: 0, kind: input, shape index: {}]   ;;  %s302_s1 = inlined_call_operand.vmem [shape: f32[128,64], index: 1, kind: input, shape index: {}]   ;;  %s303_s2 = inlined_call_operand.vmem [shape: f32[1,64], index: 2, kind: input, shape index: {}]   ;;  %s304_s3 = inlined_call_operand.hbm [shape: f32[2,64], index: 3, kind: output, shape index: {}]  }
   0x1   :  { %v44_v0 = vld [vmem:[%s302_s1 + $0x78] sm:$0xff]  ;;  %157 = vmatprep.subr.mxu0 %v219_v1  ;;  %v43_v2 = vld [vmem:[%s302_s1 + $0x70] sm:$0xff]  ;;  %189 = vmatprep.mubr.msk.f32.mxu0 %vm220_vm0, %v219_v1  ;;  %v42_v3 = vld [vmem:[%s302_s1 + $0x68] sm:$0xff] }
   0x2   :  { %158 = vmatpush3.msra.mxu0 %v44_v0  ;;  %v41_v4 = vld [vmem:[%s302_s1 + $0x60] sm:$0xff]  ;;  %v40_v5 = vld [vmem:[%s302_s1 + $0x58] sm:$0xff]  ;;  %v39_v6 = vld [vmem:[%s302_s1 + $0x50] sm:$0xff] }
   0x3   :  { %159 = vmatprep.subr.mxu0 %v219_v1  ;;  %v38_v7 = vld [vmem:[%s302_s1 + $0x48] sm:$0xff]  ;;  %v37_v8 = vld [vmem:[%s302_s1 + $0x40] sm:$0xff]  ;;  %v36_v9 = vld [vmem:[%s302_s1 + $0x38] sm:$0xff] }
   0x4   :  { %160 = vmatpush3.msra.mxu0 %v43_v2  ;;  %v35_v10 = vld [vmem:[%s302_s1 + $0x30] sm:$0xff]  ;;  %v34_v11 = vld [vmem:[%s302_s1 + $0x28] sm:$0xff]  ;;  %v33_v12 = vld [vmem:[%s302_s1 + $0x20] sm:$0xff] }
   0x5   :  { %161 = vmatprep.subr.mxu0 %v219_v1  ;;  %v32_v13 = vld [vmem:[%s302_s1 + $0x18] sm:$0xff]  ;;  %v31_v14 = vld [vmem:[%s302_s1 + $0x10] sm:$0xff]  ;;  %v30_v15 = vld [vmem:[%s302_s1 + $0x8] sm:$0xff] }
   0x6   :  { %162 = vmatpush3.msra.mxu0 %v42_v3  ;;  %v29_v16 = vld [vmem:[%s302_s1] sm:$0xff] }
   0x7   :  { %163 = vmatprep.subr.mxu0 %v219_v1  ;;  %v28_v17 = vld [vmem:[%s301_s0] sm:$0xff] }
   0x8   :  { %164 = vmatpush3.msra.mxu0 %v41_v4  ;;  %v139_v18 = vld [vmem:[%s303_s2] ss:$0 sm:$0xff] }
   0x9   :  { %165 = vmatprep.subr.mxu0 %v219_v1 }
   0xa   :  { %166 = vmatpush3.msra.mxu0 %v40_v5 }
   0xb   :  { %167 = vmatprep.subr.mxu0 %v219_v1 }
   0xc   :  { %168 = vmatpush3.msra.mxu0 %v39_v6 }
   0xd   :  { %169 = vmatprep.subr.mxu0 %v219_v1 }
   0xe   :  { %170 = vmatpush3.msra.mxu0 %v38_v7 }
   0xf   :  { %171 = vmatprep.subr.mxu0 %v219_v1 }
  0x10   :  { %172 = vmatpush3.msra.mxu0 %v37_v8 }
  0x11   :  { %173 = vmatprep.subr.mxu0 %v219_v1 }
  0x12   :  { %174 = vmatpush3.msra.mxu0 %v36_v9 }
  0x13   :  { %175 = vmatprep.subr.mxu0 %v219_v1 }
  0x14   :  { %176 = vmatpush3.msra.mxu0 %v35_v10 }
  0x15   :  { %177 = vmatprep.subr.mxu0 %v219_v1 }
  0x16   :  { %178 = vmatpush3.msra.mxu0 %v34_v11 }
  0x17   :  { %179 = vmatprep.subr.mxu0 %v219_v1 }
  0x18   :  { %180 = vmatpush3.msra.mxu0 %v33_v12 }
  0x19   :  { %181 = vmatprep.subr.mxu0 %v219_v1 }
  0x1a   :  { %182 = vmatpush3.msra.mxu0 %v32_v13 }
  0x1b   :  { %183 = vmatprep.subr.mxu0 %v219_v1 }
  0x1c   :  { %184 = vmatpush3.msra.mxu0 %v31_v14 }
  0x1d   :  { %185 = vmatprep.subr.mxu0 %v219_v1 }
  0x1e   :  { %186 = vmatpush3.msra.mxu0 %v30_v15 }
  0x1f   :  { %187 = vmatprep.subr.mxu0 %v219_v1 }
  0x20   :  { %188 = vmatpush3.msra.mxu0 %v29_v16 }
  0x21   :  { %190 = vmatmul.mubr.f32.vlgmr.msra.gmra.mxu0 %v28_v17 }
  0xe1   :  { %v111_v19 = vpop.f32.mrf.mxu0 }
  0xe2   :  { %v115_v20 = vadd.f32 %v139_v18, %v111_v19 }
  0xe3   :  { %v191_v21 = vpop.f32.mrf.mxu0 }
  0xe4   :  { %v121_v22 = vmax.f32 %v115_v20, 0.0 }
  0xe6   :  { %122 = vst [vmem:[#allocation2] sm:$0xff] %v121_v22 }
  0xe7   :  { %127 = vsyncadd [#allocation3], 96  ;;  %s221_s21 = smov [#allocation2]  }
  0xe8   :  { %s128_s1 = sshll.u32 %s221_s21, 4  ;;  %s129_s1 = int_to_ptr.vmem [resolvable:$true] %s128_s1 }
  0xe9   :  { %s197_s22 = scalar_lea.vmem %s129_s1, 32  ;;  %s201_s23 = scalar_lea.vmem %s129_s1, 128 }
  0xea   :  { %p198_p0 = scmp.ne.s32.totalorder %s129_s1, %s197_s22  ;;  %p202_p1 = scmp.lt.s32.totalorder %s129_s1, %s129_s1 }
  0xeb   :  { %p203_p2 = scmp.lt.s32.totalorder %s201_s23, %s197_s22 }
  0xed   :  { %p204_p3 = por %p203_p2, %p202_p1 }
  0xef   :  { %p205_p4 = pnand %p204_p3, %p198_p0 }
  0xf1   :  { %208 = shalt.err (!%p205_p4)
}
  0xf2   :  { %s222_s0 = smov 32   ;;  %s223_s24 = smov 2  }
  0xf3   :  { %134 = dma.vmem_to_hbm [thread:$0]  %s129_s1, 32, %s304_s3, [#allocation3], %s222_s0, %s222_s0, %s223_s24  }
  0xf4   :  { %217 = dma.done.wait [#allocation3], 128  }
  0xf5   :  { %218 = vsyncadd [#allocation3], 4294967168 }
  0xf6   :  { %138 = vsyncpa [#allocation3], 1 }

</bundles_post_ra>
